<compile_context>
chip_gen: v7x
topology: tpu7x:2x2x1
jax: 0.10.0
libtpu: 0.0.40
codegen_flags: <defaults>
</compile_context>

<pallas_src>
import functools

import jax
import jax.numpy as jnp
from jax.experimental import pallas as pl
from jax.experimental.pallas import tpu as pltpu


def _round_up(v, m):
    return ((v + m - 1) // m) * m


def _block_budget():
    """Per-generation (max block bytes, scoped VMEM limit)."""
    try:
        vmem_cap = pltpu.get_tpu_info().vmem_capacity_bytes
    except Exception:  # interpret mode / older runtimes: assume 128 MiB parts
        vmem_cap = 128 * 1024 * 1024
    if vmem_cap <= 64 * 1024 * 1024:
        # v7x-class: 64 MiB VMEM per TensorCore -> smaller blocks, tighter limit.
        return 3 * 1024 * 1024, 40 * 1024 * 1024
    # v5e / v6e: 128 MiB physical VMEM -> bigger streaming blocks.
    return 4 * 1024 * 1024, 48 * 1024 * 1024


# ---------------------------------------------------------------------------
# Main path: whole H*W resident per row tile, single streaming pass.
# ---------------------------------------------------------------------------
def _adain_kernel(x_ref, y_ref, o_ref, *, eps, hw):
    # x_ref, y_ref, o_ref: (TR, HW) blocks in VMEM.
    inv_n = 1.0 / hw
    inv_nm1 = 1.0 / (hw - 1.0)  # unbiased variance (torch.var default)

    # --- y statistics first (two-pass inside the resident tile; y dies after) ---
    yf = y_ref[...].astype(jnp.float32)
    mu_y = jnp.sum(yf, axis=-1, keepdims=True) * inv_n
    dy = yf - mu_y
    var_y = jnp.sum(dy * dy, axis=-1, keepdims=True) * inv_nm1 + eps

    # --- x statistics (same two-pass form; VMEM re-reads are free) ---
    xf = x_ref[...].astype(jnp.float32)
    mu_x = jnp.sum(xf, axis=-1, keepdims=True) * inv_n
    dx = xf - mu_x
    var_x = jnp.sum(dx * dx, axis=-1, keepdims=True) * inv_nm1 + eps

    # --- fused per-row affine: out = a*x + b (all f32, cast at store) ---
    a = jnp.sqrt(var_y) * jax.lax.rsqrt(var_x)  # (TR, 1)
    b = mu_y - a * mu_x                          # (TR, 1)
    o_ref[...] = (a * xf + b).astype(o_ref.dtype)


def _adain_rows(x2, y2, eps, max_block_bytes, vmem_limit):
    rows, HW = x2.shape
    itemsize = jnp.dtype(x2.dtype).itemsize
    hw_vmem = _round_up(HW, 128)  # actual VMEM lane footprint per row

    # Largest row tile (multiple of 8) fitting the per-generation block budget.
    tr = max_block_bytes // (hw_vmem * itemsize)
    tr = max(8, min(2048, (tr // 8) * 8))
    if rows >= 32:
        # Keep >= ~4 grid steps so the parallel axis can shard across both
        # v7x TensorCores and the DMA pipeline stays busy.
        tr = min(tr, max(8, (rows // 4) // 8 * 8))
    tr = min(tr, _round_up(rows, 8))

    grid = (pl.cdiv(rows, tr),)
    kernel = functools.partial(_adain_kernel, eps=float(eps), hw=float(HW))

    return pl.pallas_call(
        kernel,
        out_shape=jax.ShapeDtypeStruct((rows, HW), x2.dtype),
        grid_spec=pl.GridSpec(
            grid=grid,
            in_specs=[
                pl.BlockSpec((tr, HW), lambda i: (i, 0)),
                pl.BlockSpec((tr, HW), lambda i: (i, 0)),
            ],
            out_specs=pl.BlockSpec((tr, HW), lambda i: (i, 0)),
        ),
        compiler_params=pltpu.CompilerParams(
            dimension_semantics=("parallel",),
            vmem_limit_bytes=vmem_limit,
        ),
    )(x2, y2)


# ---------------------------------------------------------------------------
# Fallback path for very large H*W: lane-tiled stats + lane-tiled apply.
# ---------------------------------------------------------------------------
def _adain_stats_kernel(x_ref, y_ref, a_ref, b_ref, sx, sxx, sy, syy, *, eps, hw, tl):
    l = pl.program_id(1)

    @pl.when(l == 0)
    def _():
        sx[...] = jnp.zeros_like(sx)
        sxx[...] = jnp.zeros_like(sxx)
        sy[...] = jnp.zeros_like(sy)
        syy[...] = jnp.zeros_like(syy)

    # Mask out-of-range lanes of the (possibly partial) last lane tile.
    col = l * tl + jax.lax.broadcasted_iota(jnp.int32, x_ref.shape, 1)
    valid = col < hw
    xf = jnp.where(valid, x_ref[...].astype(jnp.float32), 0.0)
    yf = jnp.where(valid, y_ref[...].astype(jnp.float32), 0.0)

    sx[...] += jnp.sum(xf, axis=-1, keepdims=True)
    sxx[...] += jnp.sum(xf * xf, axis=-1, keepdims=True)
    sy[...] += jnp.sum(yf, axis=-1, keepdims=True)
    syy[...] += jnp.sum(yf * yf, axis=-1, keepdims=True)

    @pl.when(l == pl.num_programs(1) - 1)
    def _():
        inv_n = 1.0 / hw
        inv_nm1 = 1.0 / (hw - 1.0)
        mu_x = sx[...] * inv_n
        mu_y = sy[...] * inv_n
        var_x = jnp.maximum(sxx[...] - hw * mu_x * mu_x, 0.0) * inv_nm1 + eps
        var_y = jnp.maximum(syy[...] - hw * mu_y * mu_y, 0.0) * inv_nm1 + eps
        a = jnp.sqrt(var_y) * jax.lax.rsqrt(var_x)
        a_ref[...] = a
        b_ref[...] = mu_y - a * mu_x


def _adain_apply_kernel(a_ref, b_ref, x_ref, o_ref):
    out = a_ref[...] * x_ref[...].astype(jnp.float32) + b_ref[...]
    o_ref[...] = out.astype(o_ref.dtype)


def _adain_lane_tiled(x2, y2, eps, max_block_bytes, vmem_limit):
    rows, HW = x2.shape
    itemsize = jnp.dtype(x2.dtype).itemsize

    tr = 8
    tl = max(128, (max_block_bytes // (tr * itemsize)) // 128 * 128)
    tl = min(tl, _round_up(HW, 128))
    grid = (pl.cdiv(rows, tr), pl.cdiv(HW, tl))

    stats_kernel = functools.partial(
        _adain_stats_kernel, eps=float(eps), hw=HW, tl=tl)
    a, b = pl.pallas_call(
        stats_kernel,
        out_shape=(jax.ShapeDtypeStruct((rows, 1), jnp.float32),
                   jax.ShapeDtypeStruct((rows, 1), jnp.float32)),
        grid_spec=pl.GridSpec(
            grid=grid,
            in_specs=[
                pl.BlockSpec((tr, tl), lambda i, l: (i, l)),
                pl.BlockSpec((tr, tl), lambda i, l: (i, l)),
            ],
            out_specs=(
                pl.BlockSpec((tr, 1), lambda i, l: (i, 0)),
                pl.BlockSpec((tr, 1), lambda i, l: (i, 0)),
            ),
            scratch_shapes=[pltpu.VMEM((tr, 1), jnp.float32)] * 4,
        ),
        compiler_params=pltpu.CompilerParams(
            dimension_semantics=("parallel", "arbitrary"),
            vmem_limit_bytes=vmem_limit,
        ),
    )(x2, y2)

    return pl.pallas_call(
        _adain_apply_kernel,
        out_shape=jax.ShapeDtypeStruct((rows, HW), x2.dtype),
        grid_spec=pl.GridSpec(
            grid=grid,
            in_specs=[
                pl.BlockSpec((tr, 1), lambda i, l: (i, 0)),
                pl.BlockSpec((tr, 1), lambda i, l: (i, 0)),
                pl.BlockSpec((tr, tl), lambda i, l: (i, l)),
            ],
            out_specs=pl.BlockSpec((tr, tl), lambda i, l: (i, l)),
        ),
        compiler_params=pltpu.CompilerParams(
            dimension_semantics=("parallel", "parallel"),
            vmem_limit_bytes=vmem_limit,
        ),
    )(a, b, x2)


# ---------------------------------------------------------------------------
# Public wrapper
# ---------------------------------------------------------------------------
def adain(x, y, eps=1e-8, *, _max_block_bytes=None):
    """x, y: (N, C, H, W) arrays. Returns AdaIN(x, y) with same shape/dtype."""
    assert x.shape == y.shape, "x and y must have the same shape"
    N, C, H, W = x.shape
    HW = H * W
    assert HW > 1, "AdaIN needs H*W > 1 (unbiased variance divides by H*W - 1)"

    rows = N * C
    itemsize = jnp.dtype(x.dtype).itemsize
    max_block_bytes, vmem_limit = _block_budget()
    if _max_block_bytes is not None:  # test hook: force the lane-tiled path
        max_block_bytes = _max_block_bytes
    hw_vmem = _round_up(HW, 128)

    x2 = x.reshape(rows, HW)  # free (contiguous) reshape, no extra HBM traffic
    y2 = y.reshape(rows, HW)

    if 8 * hw_vmem * itemsize <= max_block_bytes:
        out2 = _adain_rows(x2, y2, eps, max_block_bytes, vmem_limit)
    else:
        out2 = _adain_lane_tiled(x2, y2, eps, max_block_bytes, vmem_limit)
    return out2.reshape(N, C, H, W)


def _adain_ref(x, y, eps=1e-8):
    # Pure-JAX reference mirroring the PyTorch forward (unbiased variance).
    mu_x = jnp.mean(x, axis=(2, 3), keepdims=True)
    mu_y = jnp.mean(y, axis=(2, 3), keepdims=True)
    var_x = jnp.var(x, axis=(2, 3), keepdims=True, ddof=1) + eps
    var_y = jnp.var(y, axis=(2, 3), keepdims=True, ddof=1) + eps
    return jnp.sqrt(var_y) * (x - mu_x) / jnp.sqrt(var_x) + mu_y


if __name__ == "__main__":
    key = jax.random.PRNGKey(0)
    kx, ky, kx2, ky2, kx3, ky3 = jax.random.split(key, 6)

    # Primary case: the module's expected toy shape.
    N, C, H, W = 2, 4, 16, 16
    x = jax.random.normal(kx, (N, C, H, W), dtype=jnp.float32)
    y = jax.random.normal(ky, (N, C, H, W), dtype=jnp.float32) * 2.0 + 0.5
    out = jax.block_until_ready(adain(x, y))
    ref = _adain_ref(x, y)
    assert out.shape == (N, C, H, W)
    assert jnp.allclose(out, ref, atol=1e-4, rtol=1e-4), "mismatch vs reference"

    # Ragged case: H*W not a multiple of 128, rows not a multiple of the tile
    # (exercises the partial-block path with no wrapper pad/slice).
    x2 = jax.random.normal(kx2, (2, 5, 7, 9), dtype=jnp.float32)
    y2 = jax.random.normal(ky2, (2, 5, 7, 9), dtype=jnp.float32) * 0.5 - 1.0
    out2 = jax.block_until_ready(adain(x2, y2))
    ref2 = _adain_ref(x2, y2)
    assert out2.shape == (2, 5, 7, 9)
    assert jnp.allclose(out2, ref2, atol=1e-4, rtol=1e-4), "ragged-case mismatch"

    # Large-H*W (lane-tiled) path, forced via a tiny block budget so the test
    # stays small while exercising partial lane tiles + partial row tiles.
    x3 = jax.random.normal(kx3, (2, 5, 16, 48), dtype=jnp.float32) + 3.0
    y3 = jax.random.normal(ky3, (2, 5, 16, 48), dtype=jnp.float32) * 1.5 - 2.0
    out3 = jax.block_until_ready(adain(x3, y3, _max_block_bytes=16 * 1024))
    ref3 = _adain_ref(x3, y3)
    assert out3.shape == (2, 5, 16, 48)
    assert jnp.allclose(out3, ref3, atol=1e-4, rtol=1e-4), "lane-tiled mismatch"

    print("KERNEL_OK")
</pallas_src>

<mosaic_0001>
module attributes {stable_mosaic.version = 11 : i64} {
  func.func @_adain_kernel(%arg0: i32, %arg1: memref<8x256xf32, #tpu.memory_space<vmem>>, %arg2: memref<8x256xf32, #tpu.memory_space<vmem>>, %arg3: memref<8x256xf32, #tpu.memory_space<vmem>>) attributes {dimension_semantics = [#tpu.dimension_semantics<parallel>], iteration_bounds = array<i64: 1>, scalar_prefetch = 0 : i64, scratch_operands = 0 : i64, tpu.core_type = #tpu.core_type<tc>, window_params = [{transform_indices = @transform_0, window_bounds = array<i64: 8, 256>}, {transform_indices = @transform_1, window_bounds = array<i64: 8, 256>}, {transform_indices = @transform_2, window_bounds = array<i64: 8, 256>}]} {
    %c0 = arith.constant 0 : index
    %c0_0 = arith.constant 0 : index
    %0 = vector.load %arg2[%c0, %c0_0] : memref<8x256xf32, #tpu.memory_space<vmem>>, vector<8x256xf32>
    %cst = arith.constant dense<0.000000e+00> : vector<8xf32>
    %1 = vector.multi_reduction <add>, %0, %cst [1] : vector<8x256xf32> to vector<8xf32>
    %2 = vector.shape_cast %1 : vector<8xf32> to vector<8x1xf32>
    %cst_1 = arith.constant 3.906250e-03 : f32
    %3 = vector.broadcast %cst_1 : f32 to vector<8x1xf32>
    %4 = arith.mulf %2, %3 : vector<8x1xf32>
    %5 = vector.broadcast %4 : vector<8x1xf32> to vector<8x256xf32>
    %6 = arith.subf %0, %5 : vector<8x256xf32>
    %7 = arith.mulf %6, %6 : vector<8x256xf32>
    %cst_2 = arith.constant dense<0.000000e+00> : vector<8xf32>
    %8 = vector.multi_reduction <add>, %7, %cst_2 [1] : vector<8x256xf32> to vector<8xf32>
    %9 = vector.shape_cast %8 : vector<8xf32> to vector<8x1xf32>
    %cst_3 = arith.constant 0.00392156886 : f32
    %10 = vector.broadcast %cst_3 : f32 to vector<8x1xf32>
    %11 = arith.mulf %9, %10 : vector<8x1xf32>
    %cst_4 = arith.constant 9.99999993E-9 : f32
    %12 = vector.broadcast %cst_4 : f32 to vector<8x1xf32>
    %13 = arith.addf %11, %12 : vector<8x1xf32>
    %c0_5 = arith.constant 0 : index
    %c0_6 = arith.constant 0 : index
    %14 = vector.load %arg1[%c0_5, %c0_6] : memref<8x256xf32, #tpu.memory_space<vmem>>, vector<8x256xf32>
    %cst_7 = arith.constant dense<0.000000e+00> : vector<8xf32>
    %15 = vector.multi_reduction <add>, %14, %cst_7 [1] : vector<8x256xf32> to vector<8xf32>
    %16 = vector.shape_cast %15 : vector<8xf32> to vector<8x1xf32>
    %cst_8 = arith.constant 3.906250e-03 : f32
    %17 = vector.broadcast %cst_8 : f32 to vector<8x1xf32>
    %18 = arith.mulf %16, %17 : vector<8x1xf32>
    %19 = vector.broadcast %18 : vector<8x1xf32> to vector<8x256xf32>
    %20 = arith.subf %14, %19 : vector<8x256xf32>
    %21 = arith.mulf %20, %20 : vector<8x256xf32>
    %cst_9 = arith.constant dense<0.000000e+00> : vector<8xf32>
    %22 = vector.multi_reduction <add>, %21, %cst_9 [1] : vector<8x256xf32> to vector<8xf32>
    %23 = vector.shape_cast %22 : vector<8xf32> to vector<8x1xf32>
    %cst_10 = arith.constant 0.00392156886 : f32
    %24 = vector.broadcast %cst_10 : f32 to vector<8x1xf32>
    %25 = arith.mulf %23, %24 : vector<8x1xf32>
    %cst_11 = arith.constant 9.99999993E-9 : f32
    %26 = vector.broadcast %cst_11 : f32 to vector<8x1xf32>
    %27 = arith.addf %25, %26 : vector<8x1xf32>
    %28 = math.sqrt %13 : vector<8x1xf32>
    %29 = math.rsqrt %27 : vector<8x1xf32>
    %30 = arith.mulf %28, %29 : vector<8x1xf32>
    %31 = arith.mulf %30, %18 : vector<8x1xf32>
    %32 = arith.subf %4, %31 : vector<8x1xf32>
    %33 = vector.broadcast %30 : vector<8x1xf32> to vector<8x256xf32>
    %34 = arith.mulf %33, %14 : vector<8x256xf32>
    %35 = vector.broadcast %32 : vector<8x1xf32> to vector<8x256xf32>
    %36 = arith.addf %34, %35 : vector<8x256xf32>
    %c0_12 = arith.constant 0 : index
    %c0_13 = arith.constant 0 : index
    %37 = vector.load %arg3[%c0_12, %c0_13] : memref<8x256xf32, #tpu.memory_space<vmem>>, vector<8x256xf32>
    tpu.vector_store %arg3[%c0_12, %c0_13], %36 {strides = array<i32>} : memref<8x256xf32, #tpu.memory_space<vmem>>, vector<8x256xf32>,
    return
  }
  func.func @transform_0(%arg0: i32) -> (i32, i32) {
    %c0_i32 = arith.constant 0 : i32
    %c0_i32_0 = arith.constant 0 : i32
    return %arg0, %c0_i32 : i32, i32
  }
  func.func @transform_1(%arg0: i32) -> (i32, i32) {
    %c0_i32 = arith.constant 0 : i32
    %c0_i32_0 = arith.constant 0 : i32
    return %arg0, %c0_i32 : i32, i32
  }
  func.func @transform_2(%arg0: i32) -> (i32, i32) {
    %c0_i32 = arith.constant 0 : i32
    %c0_i32_0 = arith.constant 0 : i32
    return %arg0, %c0_i32 : i32, i32
  }
}

</mosaic_0001>

<bundles_post_ra>
// kernel: tpu_custom_call.1
= control target key start
LH: loop header
LB: loop body
LE: loop exit
PB: predicated region body
PF: predicated region fallthrough
CT: control target
= control target key end

     0   :  { %7 = vsyncpa [#allocation3], 0  ;;  %s232_s0 = inlined_call_operand.hbm [shape: f32[8,256], index: 0, kind: input, shape index: {}]   ;;  %s233_s1 = inlined_call_operand.hbm [shape: f32[8,256], index: 1, kind: input, shape index: {}]   ;;  %s234_s2 = inlined_call_operand.hbm [shape: f32[8,256], index: 2, kind: output, shape index: {}]  }
   0x1   :  { %8 = vsyncpa [#allocation6], 0 }
   0x2   :  { %9 = vsyncpa [#allocation4], 0  ;;  %s178_s9 = smov [#allocation2]   ;;  %s179_s11 = smov [#allocation5]  }
   0x3   :  { %s16_s10 = sshll.u32 %s178_s9, 4  ;;  %s26_s12 = sshll.u32 %s179_s11, 4  ;;  %s17_s10 = int_to_ptr.vmem [resolvable:$true] %s16_s10  ;;  %s27_s12 = int_to_ptr.vmem [resolvable:$true] %s26_s12 }
   0x4   :  { %s106_s15 = scalar_lea.hbm %s232_s0, 256 }
   0x5   :  { %p107_p0 = scmp.ne.s32.totalorder %s232_s0, %s106_s15  ;;  %p110_p1 = scmp.lt.u32.totalorder %s106_s15, %s232_s0 }
   0x7   :  { %p112_p2 = pnand %p110_p1, %p107_p0 }
   0x9   :  { %115 = shalt.err (!%p112_p2)
}
   0xa   :  { %s116_s20 = scalar_lea.vmem %s17_s10, 256  ;;  %p121_p4 = scmp.lt.s32.totalorder %s17_s10, %s17_s10 }
   0xb   :  { %p117_p3 = scmp.ne.s32.totalorder %s17_s10, %s116_s20  ;;  %p122_p5 = scmp.lt.s32.totalorder %s116_s20, %s116_s20 }
   0xd   :  { %p123_p6 = por %p122_p5, %p121_p4 }
   0xf   :  { %p124_p7 = pnand %p123_p6, %p117_p3 }
  0x11   :  { %127 = shalt.err (!%p124_p7)
}
  0x12   :  { %19 = dma.hbm_to_vmem [thread:$0]  %s232_s0, 256, %s17_s10, [#allocation3]  }
  0x13   :  { %s128_s25 = scalar_lea.hbm %s233_s1, 256 }
  0x14   :  { %p129_p8 = scmp.ne.s32.totalorder %s233_s1, %s128_s25  ;;  %p132_p9 = scmp.lt.u32.totalorder %s128_s25, %s233_s1 }
  0x16   :  { %p134_p10 = pnand %p132_p9, %p129_p8 }
  0x18   :  { %137 = shalt.err (!%p134_p10)
}
  0x19   :  { %s138_s30 = scalar_lea.vmem %s27_s12, 256  ;;  %p143_p12 = scmp.lt.s32.totalorder %s27_s12, %s27_s12 }
  0x1a   :  { %p139_p11 = scmp.ne.s32.totalorder %s27_s12, %s138_s30  ;;  %p144_p13 = scmp.lt.s32.totalorder %s138_s30, %s138_s30 }
  0x1c   :  { %p145_p0 = por %p144_p13, %p143_p12 }
  0x1e   :  { %p146_p1 = pnand %p145_p0, %p139_p11 }
  0x20   :  { %149 = shalt.err (!%p146_p1)
}
  0x21   :  { %29 = dma.hbm_to_vmem [thread:$0]  %s233_s1, 256, %s27_s12, [#allocation6]  }
  0x22   :  { %172 = dma.done.wait [#allocation3], 256  }
  0x23   :  { %173 = vsyncadd [#allocation3], 4294967040 }
  0x24   :  { %174 = dma.done.wait [#allocation6], 256  }
  0x25   :  { %175 = vsyncadd [#allocation6], 4294967040  ;;  %v36_v0 = vld [vmem:[#allocation5] sm:$0xff]  ;;  %v37_v1 = vld [vmem:[#allocation5 + $0x8] sm:$0xff]  ;;  %s180_s1 = smov [#allocation7]  }
  0x26   :  { %v51_v2 = vld [vmem:[#allocation2] sm:$0xff]  ;;  %v38_v3 = vadd.f32 %v37_v1, %v36_v0  ;;  %v52_v4 = vld [vmem:[#allocation2 + $0x8] sm:$0xff]  ;;  %s89_s4 = sshll.u32 %s180_s1, 4  ;;  %s90_s4 = int_to_ptr.vmem [resolvable:$true] %s89_s4 }
  0x27   :  { %v53_v5 = vadd.f32 %v52_v4, %v51_v2  ;;  %s150_s5 = scalar_lea.vmem %s90_s4, 256  ;;  %p155_p3 = scmp.lt.s32.totalorder %s90_s4, %s90_s4 }
  0x28   :  { %39 = vadd.xlane.f32.xlu0 %v38_v3  ;;  %p151_p2 = scmp.ne.s32.totalorder %s90_s4, %s150_s5  ;;  %p156_p4 = scmp.lt.s32.totalorder %s150_s5, %s150_s5 }
  0x2a   :  { %p157_p5 = por %p156_p4, %p155_p3 }
  0x2c   :  { %54 = vadd.xlane.f32.xlu0 %v53_v5  ;;  %p158_p6 = pnand %p157_p5, %p151_p2 }
  0xb5   :  { %v40_v6 = vpop.xlane.xlu0 %39 }
  0xb6   :  { %v41_v7 = vmul.f32 0.00390625, %v40_v6 }
  0xb8   :  { %v42_v8 = vsub.f32 %v36_v0, %v41_v7  ;;  %v43_v9 = vsub.f32 %v37_v1, %v41_v7 }
  0xb9   :  { %v55_v10 = vpop.xlane.xlu0 %54 }
  0xba   :  { %v56_v11 = vmul.f32 0.00390625, %v55_v10  ;;  %v44_v12 = vmul.f32 %v42_v8, %v42_v8  ;;  %v45_v13 = vmul.f32 %v43_v9, %v43_v9 }
  0xbc   :  { %v46_v14 = vadd.f32 %v45_v13, %v44_v12  ;;  %v57_v15 = vsub.f32 %v51_v2, %v56_v11  ;;  %v58_v16 = vsub.f32 %v52_v4, %v56_v11 }
  0xbe   :  { %47 = vadd.xlane.f32.xlu1 %v46_v14  ;;  %v59_v17 = vmul.f32 %v57_v15, %v57_v15  ;;  %v60_v18 = vmul.f32 %v58_v16, %v58_v16 }
  0xc0   :  { %v61_v19 = vadd.f32 %v60_v18, %v59_v17 }
  0xc2   :  { %62 = vadd.xlane.f32.xlu1 %v61_v19 }
 0x14b   :  { %v48_v20 = vpop.xlane.xlu1 %47 }
 0x14c   :  { %v49_v21 = vmul.f32 0.003921569, %v48_v20 }
 0x14e   :  { %v50_v22 = vadd.f32 1e-08, %v49_v21 }
 0x14f   :  { %v63_v23 = vpop.xlane.xlu1 %62 }
 0x150   :  { %102 = vrsqrt.f32 %v50_v22  ;;  %v64_v24 = vmul.f32 0.003921569, %v63_v23  ;;  %vm68_vm0 = vcmp.eq.f32.partialorder %v50_v22, inf  ;;  %v71_v28 = vand.u32 2147483648, %v50_v22 }
 0x151   :  { %vm70_vm1 = vcmp.eq.f32.partialorder %v50_v22, 0.0 }
 0x152   :  { %v65_v25 = vadd.f32 1e-08, %v64_v24 }
 0x154   :  { %104 = vrsqrt.f32 %v65_v25 }
 0x15a   :  { %v103_v26 = vpop.eup %102 }
 0x15b   :  { %v67_v27 = vmul.f32 %v103_v26, %v50_v22 }
 0x15d   :  { %v69_v29 = vsel %vm68_vm0, %v50_v22, %v67_v27 }
 0x15e   :  { %v72_v30 = vsel %vm70_vm1, %v71_v28, %v69_v29  ;;  %v105_v31 = vpop.eup %104 }
 0x15f   :  { %v74_v32 = vmul.f32 %v105_v31, %v72_v30 }
 0x161   :  { %v75_v33 = vmul.f32 %v74_v32, %v56_v11  ;;  %v77_v35 = vmul.f32 %v74_v32, %v51_v2  ;;  %v78_v36 = vmul.f32 %v74_v32, %v52_v4 }
 0x163   :  { %v76_v34 = vsub.f32 %v41_v7, %v75_v33 }
 0x165   :  { %v79_v37 = vadd.f32 %v77_v35, %v76_v34  ;;  %v80_v38 = vadd.f32 %v78_v36, %v76_v34 }
 0x167   :  { %81 = vst [vmem:[#allocation7] sm:$0xff] %v79_v37  ;;  %82 = vst [vmem:[#allocation7 + $0x8] sm:$0xff] %v80_v38 }
 0x168   :  { %161 = shalt.err (!%p158_p6)
}
 0x169   :  { %s162_s8 = scalar_lea.hbm %s234_s2, 256 }
 0x16a   :  { %p163_p7 = scmp.ne.s32.totalorder %s234_s2, %s162_s8  ;;  %p166_p8 = scmp.lt.u32.totalorder %s162_s8, %s234_s2 }
 0x16c   :  { %p168_p9 = pnand %p166_p8, %p163_p7 }
 0x16e   :  { %171 = shalt.err (!%p168_p9)
}
 0x16f   :  { %92 = dma.vmem_to_hbm [thread:$0]  %s90_s4, 256, %s234_s2, [#allocation4]  }
 0x170   :  { %176 = dma.done.wait [#allocation4], 256  }
 0x171   :  { %177 = vsyncadd [#allocation4], 4294967040 }
 0x172   :  { %96 = vsyncpa [#allocation3], 1 }
 0x173   :  { %97 = vsyncpa [#allocation6], 1 }
 0x174   :  { %98 = vsyncpa [#allocation4], 1 }

</bundles_post_ra>
